<compile_context>
chip_gen: v7x
topology: tpu7x:2x2x1
jax: 0.10.0
libtpu: 0.0.40
codegen_flags: <defaults>
</compile_context>

<pallas_src>
import functools

import jax
import jax.numpy as jnp
from jax.experimental import pallas as pl
from jax.experimental.pallas import tpu as pltpu


def _cdiv(a: int, b: int) -> int:
    return (a + b - 1) // b


def _mlp3d_kernel(inv_s, s_total, tile_s, acc_lanes, num_s_blocks, needs_s_mask,
                  x_ref, w1_ref, b1_ref, w2_ref, b2_ref, o_ref, acc_ref):
    # x_ref : (tile_n, C, tile_s)      w1_ref: (C, C)   b1_ref: (1, C)
    # w2_ref: (C, K)                   b2_ref: (1, K)   o_ref : (tile_n, K)
    # acc_ref: (tile_n, C, acc_lanes) f32 lane-dense partial sums.
    k = pl.program_id(1)

    @pl.when(k == 0)
    def _init():
        acc_ref[...] = jnp.zeros_like(acc_ref)

    # Real (in-bounds) lanes of this S block; < tile_s only on the ragged tail.
    valid = s_total - k * tile_s

    # VPU-only partial reduction: tile_s lanes -> acc_lanes lanes.
    n_chunks = tile_s // acc_lanes          # exact by construction
    part = None
    for c in range(n_chunks):
        lo = c * acc_lanes
        xc = x_ref[:, :, lo:lo + acc_lanes].astype(jnp.float32)
        if needs_s_mask:
            lane = jax.lax.broadcasted_iota(jnp.int32, xc.shape, 2) + lo
            xc = jnp.where(lane < valid, xc, 0.0)
        part = xc if part is None else part + xc
    acc_ref[...] += part

    @pl.when(k == num_s_blocks - 1)
    def _finalize():
        # One cross-lane (XLU) reduce per n-block, then the tiny MLP on MXU.
        pooled = jnp.sum(acc_ref[...], axis=-1) * inv_s        # mean over true S
        y1 = jnp.dot(pooled, w1_ref[...],
                     preferred_element_type=jnp.float32) + b1_ref[...]
        y2 = jnp.dot(y1, w2_ref[...],
                     preferred_element_type=jnp.float32) + b2_ref[...]
        o_ref[...] = y2.astype(o_ref.dtype)


def _vmem_limit_bytes_for_device() -> int:
    """Scoped-VMEM limit derived from this generation's physical VMEM."""
    phys = 64 * 1024 * 1024                 # conservative default (v7x-sized)
    try:
        info = pltpu.get_tpu_info()
        cap = getattr(info, "vmem_capacity_bytes", None)
        if cap:
            phys = int(cap)
    except Exception:
        pass
    # ~3/4 of physical (48 MiB on v7x, 96 MiB on v5e/v6e), floor at 32 MiB.
    return max(32 * 1024 * 1024, min(phys * 3 // 4, 96 * 1024 * 1024))


def mlp_3d_forward(x, w1, b1, w2, b2, *,
                   max_n_tile=None, max_s_tile=None, vmem_limit_bytes=None):
    """MLP_3d forward (pooling_size=1).

    x: (N, C, D, H, W) float32 or bfloat16.
    w1: (C, C) [out, in], b1: (C,), w2: (K, C) [out, in], b2: (K,).
    Returns (N, K) float32.  max_n_tile / max_s_tile are test hooks that cap
    the automatically derived tile sizes.
    """
    N, C, D, H, W = x.shape
    K = w2.shape[0]
    S = D * H * W
    elem = jnp.dtype(x.dtype).itemsize

    vmem_limit = vmem_limit_bytes or _vmem_limit_bytes_for_device()

    # VMEM-resident f32 weights / biases + headroom for compiler scratch.
    weight_bytes = (C * C + C + C * K + K) * 4
    margin = 2 * 1024 * 1024
    avail = vmem_limit - weight_bytes - margin
    if avail <= 0:
        raise ValueError("input_channels too large for VMEM-resident weights")

    # ---- batch tile: shrink when C is large enough that even a 128-lane x
    #      tile (double-buffered) + lane-dense acc + upcast temps blow VMEM.
    per_row_floor = C * 128 * (2 * elem + 12) + 2 * 128 * 4
    tile_n = min(N, 128)
    if tile_n * per_row_floor > avail:
        cand = max(1, avail // per_row_floor)
        if cand >= 8:
            cand = cand // 8 * 8
        tile_n = max(1, min(tile_n, cand))
    if max_n_tile is not None:
        tile_n = max(1, min(tile_n, int(max_n_tile)))
    num_n = _cdiv(N, tile_n)

    # ---- spatial (lane) tile: as large as the per-generation budget allows,
    #      capped at ~24 MiB per buffer (review sweet spot), multiple of 128.
    fixed_rows_bytes = tile_n * (C * 128 * 12 + 2 * 128 * 4)   # acc + temps + out
    x_per_buf = max(0, avail - fixed_rows_bytes) // 2          # double-buffered
    x_per_buf = min(x_per_buf, 24 * 1024 * 1024)
    tile_s_cap = max(128, (x_per_buf // (tile_n * C * elem)) // 128 * 128)
    if max_s_tile is not None:
        tile_s_cap = max(128, min(tile_s_cap, (int(max_s_tile) // 128) * 128))

    if S <= 128:
        tile_s = S                                   # full-dim block (legal)
    else:
        tile_s = min(tile_s_cap, (S // 128) * 128)   # multiple of 128
    num_s = _cdiv(S, tile_s)
    needs_s_mask = (S % tile_s) != 0
    acc_lanes = min(128, tile_s)

    x_flat = x.reshape(N, C, S)                      # free reshape, native dtype
    w1_t = w1.T.astype(jnp.float32)                  # (in=C, out=C)
    w2_t = w2.T.astype(jnp.float32)                  # (in=C, out=K)
    b1_2d = b1.reshape(1, C).astype(jnp.float32)
    b2_2d = b2.reshape(1, K).astype(jnp.float32)

    kernel = functools.partial(
        _mlp3d_kernel, 1.0 / float(S), S, tile_s, acc_lanes, num_s, needs_s_mask)

    cost = pl.CostEstimate(
        flops=N * C * S + 2 * N * C * (C + K),
        transcendentals=0,
        bytes_accessed=N * C * S * elem + weight_bytes + N * K * 4,
    )

    out = pl.pallas_call(
        kernel,
        out_shape=jax.ShapeDtypeStruct((N, K), jnp.float32),
        grid=(num_n, num_s),
        in_specs=[
            # streamed activations: tiled along (n, s), auto double-buffered
            pl.BlockSpec((tile_n, C, tile_s), lambda n, k: (n, 0, k)),
            # weights / biases: constant index_map -> stay VMEM-resident
            pl.BlockSpec((C, C), lambda n, k: (0, 0)),
            pl.BlockSpec((1, C), lambda n, k: (0, 0)),
            pl.BlockSpec((C, K), lambda n, k: (0, 0)),
            pl.BlockSpec((1, K), lambda n, k: (0, 0)),
        ],
        out_specs=pl.BlockSpec((tile_n, K), lambda n, k: (n, 0)),
        scratch_shapes=[pltpu.VMEM((tile_n, C, acc_lanes), jnp.float32)],
        compiler_params=pltpu.CompilerParams(
            dimension_semantics=("parallel", "arbitrary"),
            vmem_limit_bytes=vmem_limit,
        ),
        cost_estimate=cost,
    )(x_flat, w1_t, b1_2d, w2_t, b2_2d)

    return out


def reference_forward(x, w1, b1, w2, b2):
    xf = x.astype(jnp.float32)
    pooled = jnp.mean(xf, axis=(2, 3, 4))            # (N, C)
    y1 = pooled @ w1.astype(jnp.float32).T + b1.astype(jnp.float32)
    y2 = y1 @ w2.astype(jnp.float32).T + b2.astype(jnp.float32)
    return y2


if __name__ == "__main__":
    key = jax.random.PRNGKey(0)

    # Small configs consistent with the module (channels=32, num_class=16,
    # pooling_size=1).  They exercise: the natural single-S-block path, the
    # multi-block path with a ragged S tail (in-kernel mask), the ragged-N
    # boundary-block path, and native bf16 streaming.
    configs = [
        ("single_block_f32",      2, 32, 16, (4, 4, 4), jnp.float32, {}),
        ("ragged_s_multi_block",  2, 32, 16, (6, 6, 6), jnp.float32,
         {"max_s_tile": 128}),
        ("ragged_n_boundary",    10, 32, 16, (4, 4, 8), jnp.float32,
         {"max_n_tile": 8}),
        ("bf16_stream",           4, 32, 16, (4, 4, 4), jnp.bfloat16, {}),
    ]

    for name, N, C, K, (D, H, W), dtype, kwargs in configs:
        key, kx, kw1, kb1, kw2, kb2 = jax.random.split(key, 6)
        x = jax.random.normal(kx, (N, C, D, H, W), dtype=jnp.float32).astype(dtype)
        # Deterministic synthetic "Linear" parameters (not a checkpoint).
        w1 = jax.random.normal(kw1, (C, C), dtype=jnp.float32) * 0.05   # (out, in)
        b1 = jax.random.normal(kb1, (C,), dtype=jnp.float32) * 0.05
        w2 = jax.random.normal(kw2, (K, C), dtype=jnp.float32) * 0.05   # (out, in)
        b2 = jax.random.normal(kb2, (K,), dtype=jnp.float32) * 0.05

        out = jax.block_until_ready(mlp_3d_forward(x, w1, b1, w2, b2, **kwargs))
        ref = reference_forward(x, w1, b1, w2, b2)
        assert out.shape == (N, K), (name, out.shape)
        tol = 1e-4 if dtype == jnp.float32 else 2e-2
        assert jnp.allclose(out, ref, atol=tol, rtol=tol), f"mismatch: {name}"

    print("KERNEL_OK")
</pallas_src>

<mosaic_0001>
module attributes {stable_mosaic.version = 11 : i64} {
  func.func @_mlp3d_kernel(%arg0: i32, %arg1: i32, %arg2: memref<2x32x64xf32, #tpu.memory_space<vmem>>, %arg3: memref<32x32xf32, #tpu.memory_space<vmem>>, %arg4: memref<1x32xf32, #tpu.memory_space<vmem>>, %arg5: memref<32x16xf32, #tpu.memory_space<vmem>>, %arg6: memref<1x16xf32, #tpu.memory_space<vmem>>, %arg7: memref<2x16xf32, #tpu.memory_space<vmem>>, %arg8: memref<2x32x64xf32, #tpu.memory_space<vmem>>) attributes {dimension_semantics = [#tpu.dimension_semantics<parallel>, #tpu.dimension_semantics<arbitrary>], iteration_bounds = array<i64: 1, 1>, scalar_prefetch = 0 : i64, scratch_operands = 1 : i64, tpu.core_type = #tpu.core_type<tc>, window_params = [{transform_indices = @transform_0, window_bounds = array<i64: 2, 32, 64>}, {pipeline_mode = #tpu.pipeline_mode<synchronous>, transform_indices = @transform_1, window_bounds = array<i64: 32, 32>}, {pipeline_mode = #tpu.pipeline_mode<synchronous>, transform_indices = @transform_2, window_bounds = array<i64: 1, 32>}, {pipeline_mode = #tpu.pipeline_mode<synchronous>, transform_indices = @transform_3, window_bounds = array<i64: 32, 16>}, {pipeline_mode = #tpu.pipeline_mode<synchronous>, transform_indices = @transform_4, window_bounds = array<i64: 1, 16>}, {transform_indices = @transform_5, window_bounds = array<i64: 2, 16>}]} {
    %c0_i32 = arith.constant 0 : i32
    %0 = arith.cmpi eq, %arg1, %c0_i32 : i32
    %1 = arith.extui %0 : i1 to i32
    %c0_i32_0 = arith.constant 0 : i32
    %2 = arith.cmpi ne, %1, %c0_i32_0 : i32
    scf.if %2 {
      %cst = arith.constant 0.000000e+00 : f32
      %10 = vector.broadcast %cst : f32 to vector<2x32x64xf32>
      %c0_11 = arith.constant 0 : index
      %c0_12 = arith.constant 0 : index
      %c0_13 = arith.constant 0 : index
      %11 = vector.load %arg8[%c0_11, %c0_12, %c0_13] : memref<2x32x64xf32, #tpu.memory_space<vmem>>, vector<2x32x64xf32>
      tpu.vector_store %arg8[%c0_11, %c0_12, %c0_13], %10 {strides = array<i32>} : memref<2x32x64xf32, #tpu.memory_space<vmem>>, vector<2x32x64xf32>,
    } else {
    }
    %c0 = arith.constant 0 : index
    %c0_1 = arith.constant 0 : index
    %c0_2 = arith.constant 0 : index
    %3 = vector.load %arg2[%c0, %c0_1, %c0_2] : memref<2x32x64xf32, #tpu.memory_space<vmem>>, vector<2x32x64xf32>
    %c0_3 = arith.constant 0 : index
    %c0_4 = arith.constant 0 : index
    %c0_5 = arith.constant 0 : index
    %4 = vector.load %arg8[%c0_3, %c0_4, %c0_5] : memref<2x32x64xf32, #tpu.memory_space<vmem>>, vector<2x32x64xf32>
    %5 = arith.addf %4, %3 : vector<2x32x64xf32>
    %c0_6 = arith.constant 0 : index
    %c0_7 = arith.constant 0 : index
    %c0_8 = arith.constant 0 : index
    %6 = vector.load %arg8[%c0_6, %c0_7, %c0_8] : memref<2x32x64xf32, #tpu.memory_space<vmem>>, vector<2x32x64xf32>
    tpu.vector_store %arg8[%c0_6, %c0_7, %c0_8], %5 {strides = array<i32>} : memref<2x32x64xf32, #tpu.memory_space<vmem>>, vector<2x32x64xf32>,
    %c0_i32_9 = arith.constant 0 : i32
    %7 = arith.cmpi eq, %arg1, %c0_i32_9 : i32
    %8 = arith.extui %7 : i1 to i32
    %c0_i32_10 = arith.constant 0 : i32
    %9 = arith.cmpi ne, %8, %c0_i32_10 : i32
    scf.if %9 {
      %c0_11 = arith.constant 0 : index
      %c0_12 = arith.constant 0 : index
      %c0_13 = arith.constant 0 : index
      %10 = vector.load %arg8[%c0_11, %c0_12, %c0_13] : memref<2x32x64xf32, #tpu.memory_space<vmem>>, vector<2x32x64xf32>
      %cst = arith.constant dense<0.000000e+00> : vector<2x32xf32>
      %11 = vector.multi_reduction <add>, %10, %cst [2] : vector<2x32x64xf32> to vector<2x32xf32>
      %cst_14 = arith.constant 1.562500e-02 : f32
      %12 = vector.broadcast %cst_14 : f32 to vector<2x32xf32>
      %13 = arith.mulf %11, %12 : vector<2x32xf32>
      %c0_15 = arith.constant 0 : index
      %c0_16 = arith.constant 0 : index
      %14 = vector.load %arg3[%c0_15, %c0_16] : memref<32x32xf32, #tpu.memory_space<vmem>>, vector<32x32xf32>
      %cst_17 = arith.constant dense<0.000000e+00> : vector<2x32xf32>
      %15 = tpu.matmul %13, %14, %cst_17 {dimension_numbers = #tpu.dot_dimension_numbers<[1], [0], [0], [1], [0, 0, 1, 1], [], []>} : vector<2x32xf32>, vector<32x32xf32>, vector<2x32xf32> -> vector<2x32xf32>
      %c0_18 = arith.constant 0 : index
      %c0_19 = arith.constant 0 : index
      %16 = vector.load %arg4[%c0_18, %c0_19] : memref<1x32xf32, #tpu.memory_space<vmem>>, vector<1x32xf32>
      %17 = vector.broadcast %16 : vector<1x32xf32> to vector<2x32xf32>
      %18 = arith.addf %15, %17 : vector<2x32xf32>
      %c0_20 = arith.constant 0 : index
      %c0_21 = arith.constant 0 : index
      %19 = vector.load %arg5[%c0_20, %c0_21] : memref<32x16xf32, #tpu.memory_space<vmem>>, vector<32x16xf32>
      %cst_22 = arith.constant dense<0.000000e+00> : vector<2x16xf32>
      %20 = tpu.matmul %18, %19, %cst_22 {dimension_numbers = #tpu.dot_dimension_numbers<[1], [0], [0], [1], [0, 0, 1, 1], [], []>} : vector<2x32xf32>, vector<32x16xf32>, vector<2x16xf32> -> vector<2x16xf32>
      %c0_23 = arith.constant 0 : index
      %c0_24 = arith.constant 0 : index
      %21 = vector.load %arg6[%c0_23, %c0_24] : memref<1x16xf32, #tpu.memory_space<vmem>>, vector<1x16xf32>
      %22 = vector.broadcast %21 : vector<1x16xf32> to vector<2x16xf32>
      %23 = arith.addf %20, %22 : vector<2x16xf32>
      %c0_25 = arith.constant 0 : index
      %c0_26 = arith.constant 0 : index
      %24 = vector.load %arg7[%c0_25, %c0_26] : memref<2x16xf32, #tpu.memory_space<vmem>>, vector<2x16xf32>
      tpu.vector_store %arg7[%c0_25, %c0_26], %23 {strides = array<i32>} : memref<2x16xf32, #tpu.memory_space<vmem>>, vector<2x16xf32>,
    } else {
    }
    return
  }
  func.func @transform_0(%arg0: i32, %arg1: i32) -> (i32, i32, i32) {
    %c0_i32 = arith.constant 0 : i32
    %c0_i32_0 = arith.constant 0 : i32
    return %arg0, %c0_i32, %arg1 : i32, i32, i32
  }
  func.func @transform_1(%arg0: i32, %arg1: i32) -> (i32, i32) {
    %c0_i32 = arith.constant 0 : i32
    %c0_i32_0 = arith.constant 0 : i32
    %c0_i32_1 = arith.constant 0 : i32
    return %c0_i32, %c0_i32_0 : i32, i32
  }
  func.func @transform_2(%arg0: i32, %arg1: i32) -> (i32, i32) {
    %c0_i32 = arith.constant 0 : i32
    %c0_i32_0 = arith.constant 0 : i32
    %c0_i32_1 = arith.constant 0 : i32
    return %c0_i32, %c0_i32_0 : i32, i32
  }
  func.func @transform_3(%arg0: i32, %arg1: i32) -> (i32, i32) {
    %c0_i32 = arith.constant 0 : i32
    %c0_i32_0 = arith.constant 0 : i32
    %c0_i32_1 = arith.constant 0 : i32
    return %c0_i32, %c0_i32_0 : i32, i32
  }
  func.func @transform_4(%arg0: i32, %arg1: i32) -> (i32, i32) {
    %c0_i32 = arith.constant 0 : i32
    %c0_i32_0 = arith.constant 0 : i32
    %c0_i32_1 = arith.constant 0 : i32
    return %c0_i32, %c0_i32_0 : i32, i32
  }
  func.func @transform_5(%arg0: i32, %arg1: i32) -> (i32, i32) {
    %c0_i32 = arith.constant 0 : i32
    %c0_i32_0 = arith.constant 0 : i32
    return %arg0, %c0_i32 : i32, i32
  }
}

</mosaic_0001>

<bundles_post_ra>
// kernel: tpu_custom_call.1
= control target key start
LH: loop header
LB: loop body
LE: loop exit
PB: predicated region body
PF: predicated region fallthrough
CT: control target
= control target key end

     0   :  { %10 = vsyncpa [#allocation4], 0  ;;  %s595_s0 = inlined_call_operand.hbm [shape: f32[2,32,64], index: 0, kind: input, shape index: {}]   ;;  %s596_s1 = inlined_call_operand.vmem [shape: f32[32,32], index: 1, kind: input, shape index: {}]   ;;  %s597_s2 = inlined_call_operand.vmem [shape: f32[1,32], index: 2, kind: input, shape index: {}]   ;;  %s598_s3 = inlined_call_operand.vmem [shape: f32[32,16], index: 3, kind: input, shape index: {}]   ;;  %s599_s4 = inlined_call_operand.vmem [shape: f32[1,16], index: 4, kind: input, shape index: {}]   ;;  %s600_s5 = inlined_call_operand.hbm [shape: f32[2,16], index: 5, kind: output, shape index: {}]  }
   0x1   :  { %11 = vsyncpa [#allocation5], 0  ;;  %s468_s18 = smov [#allocation3]   ;;  %s420_s22 = scalar_lea.hbm %s595_s0, 1024 }
   0x2   :  { %s17_s19 = sshll.u32 %s468_s18, 4  ;;  %p421_p0 = scmp.ne.s32.totalorder %s595_s0, %s420_s22  ;;  %s18_s19 = int_to_ptr.vmem [resolvable:$true] %s17_s19 }
   0x3   :  { %p424_p1 = scmp.lt.u32.totalorder %s420_s22, %s595_s0 }
   0x5   :  { %p426_p2 = pnand %p424_p1, %p421_p0 }
   0x7   :  { %429 = shalt.err (!%p426_p2)
}
   0x8   :  { %s430_s27 = scalar_lea.vmem %s18_s19, 1024  ;;  %p435_p4 = scmp.lt.s32.totalorder %s18_s19, %s18_s19 }
   0x9   :  { %p431_p3 = scmp.ne.s32.totalorder %s18_s19, %s430_s27  ;;  %p436_p5 = scmp.lt.s32.totalorder %s430_s27, %s430_s27 }
   0xb   :  { %p437_p6 = por %p436_p5, %p435_p4 }
   0xd   :  { %p438_p7 = pnand %p437_p6, %p431_p3 }
   0xf   :  { %441 = shalt.err (!%p438_p7)
}
  0x10   :  { %s469_s28 = smov 128   ;;  %s470_s29 = smov 8  }
  0x11   :  { %23 = dma.hbm_to_vmem [thread:$0]  %s595_s0, 1024, %s18_s19, [#allocation4], %s469_s28, %s469_s28, %s470_s29  }
  0x12   :  { %464 = dma.done.wait [#allocation4], 1024  }
  0x13   :  { %465 = vsyncadd [#allocation4], 4294966272  ;;  %vm39_vm0 = vcmask 523264   ;;  %v471_v0 = vmov 0.0   ;;  %v52_v1 = vld [vmem:[#allocation3 + $0x20] sm:$0xff]  ;;  %v53_v3 = vld [vmem:[#allocation3 + $0x28] sm:$0xff]  ;;  %v143_v51 = vlaneseq }
  0x14   :  { %44 = vst.msk [vmem:[#allocation2 + $0x20] sm:$0xff] %vm39_vm0, %v471_v0  ;;  %40 = vst.msk [vmem:[#allocation2] sm:$0xff] %vm39_vm0, %v471_v0  ;;  %v48_v2 = vld [vmem:[#allocation3] sm:$0xff]  ;;  %v49_v10 = vld [vmem:[#allocation3 + $0x8] sm:$0xff]  ;;  %v472_v44 = vmov 0.0|0.0   ;;  %vm473_vm1 = vmmov 0  }
  0x15   :  { %41 = vst.msk [vmem:[#allocation2 + $0x8] sm:$0xff] %vm39_vm0, %v471_v0  ;;  %42 = vst.msk [vmem:[#allocation2 + $0x10] sm:$0xff] %vm39_vm0, %v471_v0  ;;  %v54_v12 = vld [vmem:[#allocation3 + $0x30] sm:$0xff]  ;;  %v55_v19 = vld [vmem:[#allocation3 + $0x38] sm:$0xff]  ;;  %401 = vmatprep.subr.bf16.mxu0 %v472_v44  ;;  %407 = vmatprep.subr.bf16.mxu1 %v472_v44  ;;  %v144_v54 = vand.u32 127, %v143_v51  ;;  %v146_v56 = vshrl.u32 %v143_v51, 7 }
  0x16   :  { %43 = vst.msk [vmem:[#allocation2 + $0x18] sm:$0xff] %vm39_vm0, %v471_v0  ;;  %45 = vst.msk [vmem:[#allocation2 + $0x28] sm:$0xff] %vm39_vm0, %v471_v0  ;;  %v50_v15 = vld [vmem:[#allocation3 + $0x10] sm:$0xff]  ;;  %v51_v21 = vld [vmem:[#allocation3 + $0x18] sm:$0xff]  ;;  %387 = vmatprep.mubr.msk.f32.mxu0 %vm473_vm1, %v471_v0  ;;  %398 = vmatprep.mubr.msk.f32.mxu1 %vm473_vm1, %v471_v0  ;;  %vm154_vm2 = vcmask 130112   ;;  %vm161_vm3 = vcmask 195712  }
  0x17   :  { %46 = vst.msk [vmem:[#allocation2 + $0x30] sm:$0xff] %vm39_vm0, %v471_v0  ;;  %47 = vst.msk [vmem:[#allocation2 + $0x38] sm:$0xff] %vm39_vm0, %v471_v0  ;;  %v124_v41 = vld [vmem:[%s596_s1] sm:$0xff]  ;;  %v125_v42 = vld [vmem:[%s596_s1 + $0x8] sm:$0xff]  ;;  %v149_v55 = vadd.s32 4294967288, %v144_v54  ;;  %v156_v59 = vadd.s32 4294967280, %v144_v54  ;;  %v147_v0 = vsub.s32 %v144_v54, %v146_v56 }
  0x18   :  { %v402_v43 = vpack.c.bf16 %v125_v42, %v124_v41  ;;  %v126_v45 = vld [vmem:[%s596_s1 + $0x10] sm:$0xff]  ;;  %v127_v46 = vld [vmem:[%s596_s1 + $0x18] sm:$0xff]  ;;  %v264_v48 = vld [vmem:[%s598_s3] sm:$0xff]  ;;  %v163_v63 = vadd.s32 4294967272, %v144_v54  ;;  %vm168_vm4 = vcmask 261312   ;;  %vm189_vm5 = vcmask 1041409  }
  0x19   :  { %v405_v47 = vpack.c.bf16 %v127_v46, %v126_v45  ;;  %v265_v49 = vld [vmem:[%s598_s3 + $0x8] sm:$0xff]  ;;  %v152_v60 = vsub.s32 %v149_v55, %v146_v56  ;;  %vm191_vm6 = vcmask 261120   ;;  %s474_s25 = smov [#allocation6]   ;;  %vm348_vm7 = vcmask 123904  }
  0x1a   :  { %403 = vmatpush3.bf16.msra.mxu0 %v402_v43  ;;  %v408_v50 = vpack.c.bf16 %v265_v49, %v264_v48  ;;  %s356_s26 = sshll.u32 %s474_s25, 4  ;;  %s357_s26 = int_to_ptr.vmem [resolvable:$true] %s356_s26 }
  0x1b   :  { %v60_v4 = vld [vmem:[#allocation2 + $0x20] sm:$0xff]  ;;  %404 = vmatprep.subr.bf16.mxu0 %v472_v44  ;;  %p447_p9 = scmp.lt.s32.totalorder %s357_s26, %s357_s26 }
  0x1c   :  { %v56_v5 = vld [vmem:[#allocation2] sm:$0xff]  ;;  %v68_v7 = vadd.f32 %v60_v4, %v52_v1  ;;  %v57_v11 = vld [vmem:[#allocation2 + $0x8] sm:$0xff]  ;;  %v58_v16 = vld [vmem:[#allocation2 + $0x10] sm:$0xff]  ;;  %409 = vmatpush3.bf16.msra.mxu1 %v408_v50  ;;  %v159_v1 = vsub.s32 %v156_v59, %v146_v56 }
  0x1d   :  { %v61_v6 = vld [vmem:[#allocation2 + $0x28] sm:$0xff]  ;;  %v64_v8 = vadd.f32 %v56_v5, %v48_v2  ;;  %v65_v13 = vadd.f32 %v57_v11, %v49_v10  ;;  %v66_v18 = vadd.f32 %v58_v16, %v50_v15  ;;  %v59_v23 = vld [vmem:[#allocation2 + $0x18] sm:$0xff]  ;;  %410 = vmatprep.subr.bf16.mxu1 %v472_v44  ;;  %v166_v10 = vsub.s32 %v163_v63, %v146_v56 }
  0x1e   :  { %v69_v9 = vadd.f32 %v61_v6, %v53_v3  ;;  %v62_v14 = vld [vmem:[#allocation2 + $0x30] sm:$0xff]  ;;  %77 = vst.msk [vmem:[#allocation2 + $0x20] sm:$0xff] %vm39_vm0, %v68_v7  ;;  %v63_v20 = vld [vmem:[#allocation2 + $0x38] sm:$0xff]  ;;  %v67_v24 = vadd.f32 %v59_v23, %v51_v21  ;;  %406 = vmatpush3.bf16.msra.mxu0 %v405_v47 }
  0x1f   :  { %73 = vst.msk [vmem:[#allocation2] sm:$0xff] %vm39_vm0, %v64_v8  ;;  %v70_v17 = vadd.f32 %v62_v14, %v54_v12  ;;  %74 = vst.msk [vmem:[#allocation2 + $0x8] sm:$0xff] %vm39_vm0, %v65_v13  ;;  %v71_v22 = vadd.f32 %v63_v20, %v55_v19 }
  0x20   :  { %78 = vst.msk [vmem:[#allocation2 + $0x28] sm:$0xff] %vm39_vm0, %v69_v9  ;;  %75 = vst.msk [vmem:[#allocation2 + $0x10] sm:$0xff] %vm39_vm0, %v66_v18 }
  0x21   :  { %79 = vst.msk [vmem:[#allocation2 + $0x30] sm:$0xff] %vm39_vm0, %v70_v17  ;;  %80 = vst.msk [vmem:[#allocation2 + $0x38] sm:$0xff] %vm39_vm0, %v71_v22 }
  0x22   :  { %76 = vst.msk [vmem:[#allocation2 + $0x18] sm:$0xff] %vm39_vm0, %v67_v24 }
  0x25   :  { %v88_v25 = vld [vmem:[#allocation2 + $0x20] sm:$0xff] }
  0x26   :  { %v84_v26 = vld [vmem:[#allocation2] sm:$0xff]  ;;  %v104_v28 = vsel %vm39_vm0, %v88_v25, 0.0  ;;  %v85_v30 = vld [vmem:[#allocation2 + $0x8] sm:$0xff] }
  0x27   :  { %v89_v27 = vld [vmem:[#allocation2 + $0x28] sm:$0xff]  ;;  %v92_v29 = vsel %vm39_vm0, %v84_v26, 0.0  ;;  %105 = vadd.xlane.f32.xlu1 %v104_v28  ;;  %v95_v32 = vsel %vm39_vm0, %v85_v30, 0.0  ;;  %v86_v34 = vld [vmem:[#allocation2 + $0x10] sm:$0xff] }
  0x28   :  { %93 = vadd.xlane.f32.xlu0 %v92_v29  ;;  %v107_v31 = vsel %vm39_vm0, %v89_v27, 0.0  ;;  %v90_v33 = vld [vmem:[#allocation2 + $0x30] sm:$0xff]  ;;  %v98_v36 = vsel %vm39_vm0, %v86_v34, 0.0  ;;  %v91_v37 = vld [vmem:[#allocation2 + $0x38] sm:$0xff] }
  0x29   :  { %v110_v35 = vsel %vm39_vm0, %v90_v33, 0.0  ;;  %v87_v38 = vld [vmem:[#allocation2 + $0x18] sm:$0xff]  ;;  %v113_v39 = vsel %vm39_vm0, %v91_v37, 0.0  ;;  %v266_v28 = vld [vmem:[%s598_s3 + $0x10] sm:$0xff] }
  0x2a   :  { %v101_v40 = vsel %vm39_vm0, %v87_v38, 0.0  ;;  %v267_v29 = vld [vmem:[%s598_s3 + $0x18] sm:$0xff]  ;;  %s442_s3 = scalar_lea.vmem %s357_s26, 32 }
  0x2b   :  { %108 = vadd.xlane.f32.xlu1 %v107_v31  ;;  %v411_v30 = vpack.c.bf16 %v267_v29, %v266_v28  ;;  %v365_v31 = vld [vmem:[%s597_s2] ss:$0 sm:$0xff]  ;;  %p443_p8 = scmp.ne.s32.totalorder %s357_s26, %s442_s3  ;;  %p448_p10 = scmp.lt.s32.totalorder %s442_s3, %s442_s3 }
  0x2c   :  { %96 = vadd.xlane.f32.xlu0 %v95_v32 }
  0x2d   :  { %412 = vmatpush3.bf16.msra.mxu1 %v411_v30  ;;  %p449_p11 = por %p448_p10, %p447_p9 }
  0x2f   :  { %111 = vadd.xlane.f32.xlu1 %v110_v35  ;;  %v367_v35 = vld [vmem:[%s599_s4] ss:$0 sm:$0xff]  ;;  %p450_p12 = pnand %p449_p11, %p443_p8 }
  0x30   :  { %99 = vadd.xlane.f32.xlu0 %v98_v36 }
  0x33   :  { %114 = vadd.xlane.f32.xlu1 %v113_v39 }
  0x34   :  { %102 = vadd.xlane.f32.xlu0 %v101_v40 }
  0xb4   :  { %v106_v52 = vpop.xlane.xlu1 %105 }
  0xb5   :  { %v94_v53 = vpop.xlane.xlu0 %93  ;;  %v120_v4 = vmul.f32 0.015625, %v106_v52 }
  0xb6   :  { %v116_v5 = vmul.f32 0.015625, %v94_v53 }
  0xb7   :  { %v173_v15 = vrot.slane %v120_v4, %v147_v0 }
  0xb8   :  { %v109_v57 = vpop.xlane.xlu1 %108  ;;  %v148_v16 = vrot.slane %v116_v5, %v147_v0 }
  0xb9   :  { %v97_v58 = vpop.xlane.xlu0 %96  ;;  %v121_v61 = vmul.f32 0.015625, %v109_v57 }
  0xba   :  { %v117_v62 = vmul.f32 0.015625, %v97_v58 }
  0xbb   :  { %v177_v8 = vrot.slane %v121_v61, %v152_v60 }
  0xbc   :  { %v112_v2 = vpop.xlane.xlu1 %111  ;;  %v153_v9 = vrot.slane %v117_v62, %v152_v60 }
  0xbd   :  { %v100_v3 = vpop.xlane.xlu0 %99  ;;  %v122_v6 = vmul.f32 0.015625, %v112_v2  ;;  %v178_v19 = vsel %vm154_vm2, %v177_v8, %v173_v15 }
  0xbe   :  { %v118_v7 = vmul.f32 0.015625, %v100_v3  ;;  %v155_v20 = vsel %vm154_vm2, %v153_v9, %v148_v16 }
  0xbf   :  { %v182_v11 = vrot.slane %v122_v6, %v159_v1 }
  0xc0   :  { %v160_v12 = vrot.slane %v118_v7, %v159_v1  ;;  %v115_v13 = vpop.xlane.xlu1 %114 }
  0xc1   :  { %v103_v14 = vpop.xlane.xlu0 %102  ;;  %v123_v17 = vmul.f32 0.015625, %v115_v13  ;;  %v183_v23 = vsel %vm161_vm3, %v182_v11, %v178_v19 }
  0xc2   :  { %v119_v18 = vmul.f32 0.015625, %v103_v14  ;;  %v162_v24 = vsel %vm161_vm3, %v160_v12, %v155_v20 }
  0xc3   :  { %v187_v21 = vrot.slane %v123_v17, %v166_v10 }
  0xc4   :  { %v167_v22 = vrot.slane %v119_v18, %v166_v10 }
  0xc5   :  { %v188_v26 = vsel %vm168_vm4, %v187_v21, %v183_v23 }
  0xc6   :  { %v169_v25 = vsel %vm168_vm4, %v167_v22, %v162_v24 }
  0xc7   :  { %v190_v27 = vsel %vm189_vm5, %v188_v26, %v169_v25 }
  0xc8   :  { %388 = vmatmul.mubr.msk.f32.vlgmr.msra.gmra.mrb[0].mxu0 %vm191_vm6, %v190_v27 }
 0x19b   :  { %v260_v32 = vpop.f32.mrb[0].mxu0 }
 0x19c   :  { %v261_v33 = vadd.f32 %v365_v31, %v260_v32  ;;  %v389_v34 = vpop.f32.mrb[1].mxu0 }
 0x19e   :  { %399 = vmatmul.mubr.msk.f32.vlgmr.msra.gmra.mrb[0].mxu1 %vm191_vm6, %v261_v33 }
 0x271   :  { %v344_v36 = vpop.f32.mrb[0].mxu1 }
 0x272   :  { %v345_v37 = vadd.f32 %v367_v35, %v344_v36  ;;  %v400_v38 = vpop.f32.mrb[1].mxu1 }
 0x274   :  { %349 = vst.msk [vmem:[#allocation6] sm:$0x3] %vm348_vm7, %v345_v37 }
 0x275   :  { %453 = shalt.err (!%p450_p12)
}
 0x276   :  { %s454_s28 = scalar_lea.hbm %s600_s5, 32 }
 0x277   :  { %p455_p13 = scmp.ne.s32.totalorder %s600_s5, %s454_s28  ;;  %p458_p0 = scmp.lt.u32.totalorder %s454_s28, %s600_s5 }
 0x279   :  { %p460_p1 = pnand %p458_p0, %p455_p13 }
 0x27b   :  { %463 = shalt.err (!%p460_p1)
}
 0x27c   :  { %359 = dma.vmem_to_hbm [thread:$0]  %s357_s26, 32, %s600_s5, [#allocation5]  }
 0x27d   :  { %466 = dma.done.wait [#allocation5], 32  }
 0x27e   :  { %467 = vsyncadd [#allocation5], 4294967264 }
 0x27f   :  { %363 = vsyncpa [#allocation4], 1 }
 0x280   :  { %364 = vsyncpa [#allocation5], 1 }

</bundles_post_ra>
